<compile_context>
chip_gen: v5e
topology: v5e:2x2
jax: 0.10.0
libtpu: 0.0.40
codegen_flags: <defaults>
</compile_context>

<pallas_src>
import jax
import jax.numpy as jnp
from jax.experimental import pallas as pl
from jax.experimental.pallas import tpu as pltpu

_LANE = 128
# Below this many elements, plain JAX beats kernel dispatch + HBM<->VMEM DMA.
_PALLAS_MIN_ELEMS = 64 * 1024


def leaf_encoder_kernel(wb_ref, x_ref, out_ref):
    # wb_ref: (2,) f32 in SMEM -> [weight, bias] scalars (loop-invariant).
    # x_ref / out_ref: (tile_rows, 128) f32 VMEM tiles of packed leaf radii.
    w = wb_ref[0]
    b = wb_ref[1]
    out_ref[...] = jnp.tanh(x_ref[...] * w + b)  # VPU mul/add + EUP tanh


def _pick_tile_rows(rows):
    """Rows of 128 f32 lanes per grid step, sized per generation's VMEM/HBM."""
    max_rows = 4096  # 2 MiB/buffer -> 8 MiB double-buffered (fits v5e's 16 MiB)
    try:
        kind = jax.devices()[0].device_kind.lower()
        if "v7" in kind:
            max_rows = 8192  # 4 MiB/buffer; faster HBM wants bigger tiles
    except Exception:
        pass
    tile_rows = min(max_rows, rows)
    tile_rows = max(8, (tile_rows // 8) * 8)  # keep sublane-dim a multiple of 8
    return tile_rows


def _pallas_tanh_affine(x, wb):
    """x: (rows, 128) f32, wb: (2,) f32 -> tanh(x * wb[0] + wb[1])."""
    rows = x.shape[0]
    tile_rows = _pick_tile_rows(rows)
    return pl.pallas_call(
        leaf_encoder_kernel,
        out_shape=jax.ShapeDtypeStruct((rows, _LANE), jnp.float32),
        grid_spec=pl.GridSpec(
            grid=(pl.cdiv(rows, tile_rows),),  # ragged last block is masked
            in_specs=[
                pl.BlockSpec(memory_space=pltpu.MemorySpace.SMEM),  # [w, b]
                pl.BlockSpec((tile_rows, _LANE), lambda i: (i, 0)),
            ],
            out_specs=pl.BlockSpec((tile_rows, _LANE), lambda i: (i, 0)),
        ),
        compiler_params=pltpu.CompilerParams(
            # Memory-bound op: this is a harmless default, not a dual-TC win.
            dimension_semantics=("parallel",),
        ),
    )(wb, x)


def leaf_encoder_batched(radius, weight, bias):
    """Apply LeafEncoder to a batch of leaf radii.

    radius: (N,) f32, weight: (1,1) f32, bias: (1,) f32  ->  (N,) f32
    """
    radius = jnp.asarray(radius, jnp.float32).reshape(-1)
    n = radius.shape[0]
    w = weight.astype(jnp.float32).reshape(())
    b = bias.astype(jnp.float32).reshape(())

    # Tiny batches: kernel dispatch would be pure overhead.
    if n < _PALLAS_MIN_ELEMS:
        return jnp.tanh(radius * w + b)

    wb = jnp.stack([w, b])  # (2,) f32, lives in SMEM inside the kernel

    # 128-aligned prefix goes through Pallas with no padded copy.
    n_main = (n // _LANE) * _LANE
    if n_main == n:
        main = radius.reshape(n // _LANE, _LANE)
    else:
        main = radius[:n_main].reshape(n_main // _LANE, _LANE)
    out_main = _pallas_tanh_affine(main, wb).reshape(-1)

    if n_main == n:
        return out_main
    # <128-element tail: plain JAX (cheaper than a second kernel launch).
    tail = jnp.tanh(radius[n_main:] * w + b)
    return jnp.concatenate([out_main, tail])


def leaf_encoder(radius_scalar, weight, bias):
    """Exact module semantics: one leaf radius -> (1,1) feature.

    Single scalar -> plain-JAX fast path (no Pallas dispatch for 4 bytes).
    """
    feat = leaf_encoder_batched(
        jnp.reshape(jnp.asarray(radius_scalar, jnp.float32), (1,)), weight, bias
    )
    return feat.reshape(1, 1)


if __name__ == "__main__":
    key = jax.random.PRNGKey(0)
    k_rad, k_w, k_b = jax.random.split(key, 3)

    # nn.Linear(1,1) default init: U(-1/sqrt(fan_in), 1/sqrt(fan_in)), fan_in=1.
    weight = jax.random.uniform(k_w, (1, 1), jnp.float32, minval=-1.0, maxval=1.0)
    bias = jax.random.uniform(k_b, (1,), jnp.float32, minval=-1.0, maxval=1.0)

    # Batch large enough to take the Pallas path, with a non-multiple-of-128
    # length to exercise the unpadded tail handling.
    n_leaves = 100_003
    radius = jax.random.uniform(k_rad, (n_leaves,), jnp.float32, minval=0.1, maxval=2.0)

    out = jax.block_until_ready(leaf_encoder_batched(radius, weight, bias))
    ref = jnp.tanh(radius * weight[0, 0] + bias[0])
    assert out.shape == (n_leaves,), out.shape
    assert jnp.allclose(out, ref, atol=1e-6, rtol=1e-6)

    # Single-leaf call matching the PyTorch module forward exactly: (1,1) output.
    single = jax.block_until_ready(leaf_encoder(radius[0], weight, bias))
    single_ref = jnp.tanh(radius[0] * weight[0, 0] + bias[0]).reshape(1, 1)
    assert single.shape == (1, 1), single.shape
    assert jnp.allclose(single, single_ref, atol=1e-6, rtol=1e-6)

    print("KERNEL_OK")
</pallas_src>

<mosaic_0001>
module attributes {stable_mosaic.version = 11 : i64} {
  func.func @leaf_encoder_kernel(%arg0: i32, %arg1: memref<2xf32, #tpu.memory_space<smem>>, %arg2: memref<776x128xf32, #tpu.memory_space<vmem>>, %arg3: memref<776x128xf32, #tpu.memory_space<vmem>>) attributes {dimension_semantics = [#tpu.dimension_semantics<parallel>], iteration_bounds = array<i64: 2>, scalar_prefetch = 0 : i64, scratch_operands = 0 : i64, tpu.core_type = #tpu.core_type<tc>, window_params = [{transform_indices = @transform_0, window_bounds = array<i64: 2>}, {transform_indices = @transform_1, window_bounds = array<i64: 776, 128>}, {transform_indices = @transform_2, window_bounds = array<i64: 776, 128>}]} {
    %c0 = arith.constant 0 : index
    %0 = memref.load %arg1[%c0] : memref<2xf32, #tpu.memory_space<smem>>
    %c1 = arith.constant 1 : index
    %1 = memref.load %arg1[%c1] : memref<2xf32, #tpu.memory_space<smem>>
    %c0_0 = arith.constant 0 : index
    %c0_1 = arith.constant 0 : index
    %2 = vector.load %arg2[%c0_0, %c0_1] : memref<776x128xf32, #tpu.memory_space<vmem>>, vector<776x128xf32>
    %3 = vector.broadcast %0 : f32 to vector<776x128xf32>
    %4 = arith.mulf %2, %3 : vector<776x128xf32>
    %5 = vector.broadcast %1 : f32 to vector<776x128xf32>
    %6 = arith.addf %4, %5 : vector<776x128xf32>
    %7 = math.tanh %6 : vector<776x128xf32>
    %c0_2 = arith.constant 0 : index
    %c0_3 = arith.constant 0 : index
    %8 = vector.load %arg3[%c0_2, %c0_3] : memref<776x128xf32, #tpu.memory_space<vmem>>, vector<776x128xf32>
    tpu.vector_store %arg3[%c0_2, %c0_3], %7 {strides = array<i32>} : memref<776x128xf32, #tpu.memory_space<vmem>>, vector<776x128xf32>,
    return
  }
  func.func @transform_0(%arg0: i32) -> i32 {
    %c0_i32 = arith.constant 0 : i32
    %c0_i32_0 = arith.constant 0 : i32
    return %c0_i32 : i32
  }
  func.func @transform_1(%arg0: i32) -> (i32, i32) {
    %c0_i32 = arith.constant 0 : i32
    %c0_i32_0 = arith.constant 0 : i32
    return %arg0, %c0_i32 : i32, i32
  }
  func.func @transform_2(%arg0: i32) -> (i32, i32) {
    %c0_i32 = arith.constant 0 : i32
    %c0_i32_0 = arith.constant 0 : i32
    return %arg0, %c0_i32 : i32, i32
  }
}

</mosaic_0001>

<bundles_post_ra>
// kernel: tpu_custom_call.1
= control target key start
LH: loop header
LB: loop body
LE: loop exit
PB: predicated region body
PF: predicated region fallthrough
CT: control target
= control target key end

     0   :  { %7 = vsyncpa [#allocation5], 0  ;;  %s2055_s0 = inlined_call_operand.hbm [shape: f32[2], index: 0, kind: input, shape index: {}]   ;;  %s2056_s1 = inlined_call_operand.hbm [shape: f32[781,128], index: 1, kind: input, shape index: {}]   ;;  %s2057_s2 = inlined_call_operand.hbm [shape: f32[781,128], index: 2, kind: output, shape index: {}]  }
   0x1   :  { %8 = vsyncpa [#allocation3], 0 }
   0x2   :  { %10 = vsyncpa [#allocation3 + $0x1], 0 }
   0x3   :  { %11 = vsyncpa [#allocation4], 0 }
   0x4   :  { %13 = vsyncpa [#allocation4 + $0x1], 0  ;;  %s1222_s9 = smov 0   ;;  %s1224_s10 = smov 0  }
   0x5   :  { %s1226_s11 = smov 0   ;;  %s1228_s12 = smov 0  }
   0x6 LB: > { %s1243_s13 = sadd.s32 4294967295, %s1198_s12   ;;  %s792_s14 = sadd.s32 4294967294, %s1198_s12   ;;  %s1198_s12 = sphi %s1228_s12, %s2074_s12   ;;  %s1194_s11 = sphi %s1226_s11, %s2073_s11   ;;  %s1190_s10 = sphi %s1224_s10, %s2072_s10   ;;  %s1186_s9 = sphi %s1222_s9, %s2071_s9  }
   0x7   : > { %s1247_s15 = sadd.s32 1, %s1198_s12   ;;  %s47_s16 = sadd.s32 1, %s1194_s11 }
   0x8   : > { %s44_s17 = ssub.s32 %s1198_s12, %s1247_s15  ;;  %p54_p0 = scmp.ne.s32.totalorder %s1194_s11, %s1190_s10 }
   0x9   : > { %p45_p1 = scmp.eq.s32.totalorder %s44_s17, 0  ;;  %p55_p2 = scmp.eq.s32.totalorder %s1198_s12, 0 }
   0xa   : > { %p60_p3 = scmp.ne.s32.totalorder %s1190_s10, %s1186_s9  ;;  %p2059_p4 = scmp.eq.s32.totalorder %s1243_s13, 0 }
   0xb   : > { %s1259_s18 = scalar_select %p45_p1, %s1194_s11, %s47_s16  }
   0xc   : > { %p1261_p5 = por %p55_p2, %p54_p0  ;;  %p1267_p6 = por %p2059_p4, %p60_p3 }
   0xd   : > { %p84_p7 = scmp.eq.s32.totalorder %s1243_s13, 1  ;;  %p90_p8 = scmp.eq.s32.totalorder %s792_s14, 1 }
   0xe   : > { %p793_p9 = scmp.ge.s32.totalorder %s1198_s12, 1  ;;  %p97_p10 = scmp.lt.s32.totalorder %s1198_s12, 3 }
   0xf   : > { %p1274_p11 = por %p84_p7, %p54_p0  ;;  %p1278_p12 = por %p90_p8, %p60_p3 }
  0x10   : > { %p1282_p13 = pnand %p793_p9, %p97_p10  ;;  %s109_s26 = sshll.u32 %s2055_s0, 4  ;;  %s110_s26 = int_to_ptr.hbm [resolvable:$true] %s109_s26 }
  0x11   : > { %s2063_s22 = scalar_select %p1278_p12, 1, 0 }
  0x12   : > { %p821_p1 = pneg %p1282_p13  ;;  %s1200_s27 = smov [#allocation2]  }
  0x13   : > { %p2058_p2 = scmp.ge.s32.totalorder %s1198_s12, 2 }
  0x14   : > { %p822_p0 = pnand %p821_p1, %p2059_p4 }
  0x15   : > { %116 = sbr.rel (%p2058_p2) target bundleno = 64 (0x40), region = 20 }
  0x16   : > { %824 = dma.hbm_to_smem (!%p822_p0), %s110_s26, 16, %s1200_s27, [#allocation5]  }
  0x1a   : > { %119 = sbr.rel (!%p1261_p5) target bundleno = 64 (0x40), region = 24  ;;  %s120_s28 = sand.u32 (%p1261_p5), 1, %s1194_s11  }
  0x1b   : > { %s125_s29 = smul.u32 (%p1261_p5), 97, %s1198_s12  ;;  %s1303_s7 = scalar_lea.sflag (%p1261_p5), [#allocation3], %s120_s28 }
  0x1c   : > { %s813_s30 = smul.u32 (%p1261_p5), 776, %s120_s28 }
  0x1d   : > { %s126_s3 = ssub.s32 (%p1261_p5), 98, %s125_s29 }
  0x1e   : > { %p127_p3 = scmp.lt.s32.totalorder (%p1261_p5), %s126_s3, 97  ;;  %s124_s8 = scalar_lea.vmem (%p1261_p5), [#allocation6], %s813_s30 }
  0x20   : > { %s2076_s3 = smov (!%p127_p3, %s126_s3), 97 }
  0x21   : > { %s796_s4 = sshll.u32 %s2076_s3, 3 }
  0x22   : > { %s130_s5 = ssub.s32 776, %s796_s4 }
  0x23   : > { %s131_s6 = sshll.u32 %s130_s5, 4 }
  0x24   : > { %132 = vsyncadd %s1303_s7, %s131_s6  ;;  %p1306_p5 = scmp.ne.s32.totalorder %s796_s4, 0  ;;  %s811_s16 = smul.u32 776, %s1198_s12 }
  0x25   : > { %s1311_s17 = sshll.u32 %s124_s8, 4  ;;  %s800_s19 = sshll.u32 %s2076_s3, 7  ;;  %s140_s17 = int_to_ptr.vmem [resolvable:$true] %s1311_s17 }
  0x26   : > { %s135_s26 = scalar_lea.hbm %s2056_s1, %s811_s16  ;;  %s1080_s29 = sshrl.u32 %s800_s19, 4 }
  0x27   : > { %s137_s27 = sshll.u32 %s135_s26, 4  ;;  %s1089_s6 = scalar_lea.hbm %s2056_s1, 784  ;;  %s1318_s27 = int_to_ptr.hbm [resolvable:$true] %s137_s27 }
  0x28   : > { %s1078_s28 = sshra.s32 %s1318_s27, 4  ;;  %s1079_s28 = int_to_ptr.hbm [resolvable:$true] %s1078_s28 }
  0x29   : > { %s1085_s30 = scalar_lea.hbm %s1079_s28, %s1080_s29  ;;  %p1090_p10 = scmp.lt.s32.totalorder %s1079_s28, %s2056_s1 }
  0x2a   : > { %p1086_p7 = scmp.ne.s32.totalorder %s1079_s28, %s1085_s30  ;;  %p1091_p1 = scmp.lt.s32.totalorder %s1089_s6, %s1085_s30 }
  0x2c   : > { %p1087_p8 = pnand %p1086_p7, %p1306_p5  ;;  %p1092_p0 = por %p1091_p1, %p1090_p10 }
  0x2e   : > { %p1088_p9 = pneg %p1087_p8 }
  0x30   : > { %p1093_p3 = pnand %p1092_p0, %p1088_p9 }
  0x32   : > { %1096 = shalt.err (!%p1093_p3)
}
  0x33   : > { %s1097_s24 = sshra.s32 %s140_s17, 4  ;;  %s1201_s26 = smov [#allocation6]   ;;  %s1098_s24 = int_to_ptr.vmem [resolvable:$true] %s1097_s24 }
  0x34   : > { %s1104_s25 = scalar_lea.vmem %s1098_s24, %s1080_s29  ;;  %s1108_s4 = scalar_lea.vmem %s1201_s26, 1552 }
  0x35   : > { %p1105_p7 = scmp.ne.s32.totalorder %s1098_s24, %s1104_s25  ;;  %p1110_p4 = scmp.lt.s32.totalorder %s1108_s4, %s1104_s25 }
  0x37   : > { %p1106_p8 = pnand %p1105_p7, %p1306_p5 }
  0x39   : > { %p1107_p2 = pneg %p1106_p8 }
  0x3b   : > { %p1112_p12 = pnand %p1110_p4, %p1107_p2 }
  0x3d   : > { %1115 = shalt.err (!%p1112_p12)
}
  0x3e   : > { %s1202_s28 = smov 128   ;;  %s1203_s30 = smov 8  }
  0x3f   : > { %145 = dma.hbm_to_vmem [thread:$0]  (%p1306_p5), %s1318_s27, %s800_s19, %s140_s17, %s1303_s7, %s1202_s28, %s1202_s28, %s1203_s30  }
  0x40 PF: > { %151 = sbr.rel (%p1282_p13) target bundleno = 223 (0xdf), region = 28  ;;  %p2066_p9 = scmp.eq.s32.totalorder (!%p1282_p13), %s1243_s13, 0 }
  0x45   : > { %1173 = dma.done.wait (%p2066_p9), [#allocation5], 16   ;;  %p2067_p4 = pmov %p2066_p9 }
  0x46   : > { %s1350_s29 = sand.u32 1, %s1190_s10  }
  0x47   : > { %1175 = vsyncadd (%p2067_p4), [#allocation5], 4294967280  ;;  %s814_s3 = smul.u32 776, %s1350_s29  ;;  %s159_s7 = scalar_lea.sflag [#allocation3], %s1350_s29 }
  0x49   : > { %s1356_s14 = scalar_lea.vmem [#allocation6], %s814_s3 }
  0x4a   : > { %1177 = dma.done.wait (%p1267_p6), %s159_s7, 12416  }
  0x4b   : > { %1179 = vsyncadd (%p1267_p6), %s159_s7, 4294954880 }
  0x4c   : > { %168 = sfence }
  0x4d   : > { %s195_s23 = sld [smem:[#allocation2]]  ;;  %v197_v0 = vld [vmem:[%s1356_s14] sm:$0xff]  ;;  %v198_v1 = vld [vmem:[%s1356_s14 + $0x8] sm:$0xff]  ;;  %v199_v2 = vld [vmem:[%s1356_s14 + $0x10] sm:$0xff]  ;;  %s1426_s20 = scalar_lea.vmem [#allocation7], %s814_s3 }
  0x4e   : > { %s803_s17 = sld [smem:[#allocation2 + $0x1]]  ;;  %v200_v3 = vld [vmem:[%s1356_s14 + $0x18] sm:$0xff]  ;;  %v201_v4 = vld [vmem:[%s1356_s14 + $0x20] sm:$0xff]  ;;  %v202_v5 = vld [vmem:[%s1356_s14 + $0x28] sm:$0xff]  ;;  %s685_s19 = scalar_lea.sflag [#allocation4], %s1350_s29 }
  0x4f   : > { %v203_v6 = vld [vmem:[%s1356_s14 + $0x30] sm:$0xff]  ;;  %v204_v8 = vld [vmem:[%s1356_s14 + $0x38] sm:$0xff]  ;;  %v205_v17 = vld [vmem:[%s1356_s14 + $0x40] sm:$0xff]  ;;  %s692_s27 = smul.u32 (%p1274_p11), 97, %s1243_s13 }
  0x50   : > { %v206_v18 = vld [vmem:[%s1356_s14 + $0x48] sm:$0xff]  ;;  %v207_v23 = vld [vmem:[%s1356_s14 + $0x50] sm:$0xff]  ;;  %v208_v24 = vld [vmem:[%s1356_s14 + $0x58] sm:$0xff] }
  0x51   : > { %v209_v25 = vld [vmem:[%s1356_s14 + $0x60] sm:$0xff]  ;;  %v210_v31 = vld [vmem:[%s1356_s14 + $0x68] sm:$0xff]  ;;  %v211_v35 = vld [vmem:[%s1356_s14 + $0x70] sm:$0xff]  ;;  %s693_s5 = ssub.s32 (%p1274_p11), 98, %s692_s27 }
  0x52   : > { %v212_v36 = vld [vmem:[%s1356_s14 + $0x78] sm:$0xff]  ;;  %v213_v39 = vld [vmem:[%s1356_s14 + $0x80] sm:$0xff]  ;;  %v214_v43 = vld [vmem:[%s1356_s14 + $0x88] sm:$0xff]  ;;  %p694_p6 = scmp.lt.s32.totalorder (%p1274_p11), %s693_s5, 97 }
  0x53   : > { %v1369_v7 = vstv %s195_s23  ;;  %v215_v44 = vld [vmem:[%s1356_s14 + $0x90] sm:$0xff]  ;;  %v216_v45 = vld [vmem:[%s1356_s14 + $0x98] sm:$0xff]  ;;  %v217_v52 = vld [vmem:[%s1356_s14 + $0xa0] sm:$0xff] }
  0x54   : > { %v295_v9 = vmul.f32 %v1369_v7, %v197_v0  ;;  %v1373_v10 = vstv %s803_s17  ;;  %v296_v11 = vmul.f32 %v1369_v7, %v198_v1  ;;  %v297_v12 = vmul.f32 %v1369_v7, %v199_v2  ;;  %v218_v53 = vld [vmem:[%s1356_s14 + $0xa8] sm:$0xff]  ;;  %v219_v58 = vld [vmem:[%s1356_s14 + $0xb0] sm:$0xff]  ;;  %v220_v59 = vld [vmem:[%s1356_s14 + $0xb8] sm:$0xff] }
  0x55   : > { %v298_v13 = vmul.f32 %v1369_v7, %v200_v3  ;;  %v299_v14 = vmul.f32 %v1369_v7, %v201_v4  ;;  %v300_v15 = vmul.f32 %v1369_v7, %v202_v5  ;;  %v301_v16 = vmul.f32 %v1369_v7, %v203_v6  ;;  %v221_v60 = vld [vmem:[%s1356_s14 + $0xc0] sm:$0xff]  ;;  %v222_v5 = vld [vmem:[%s1356_s14 + $0xc8] sm:$0xff] }
  0x56   : > { %v393_v19 = vadd.f32 %v1373_v10, %v295_v9  ;;  %v394_v20 = vadd.f32 %v1373_v10, %v296_v11  ;;  %v395_v21 = vadd.f32 %v1373_v10, %v297_v12  ;;  %v302_v22 = vmul.f32 %v1369_v7, %v204_v8  ;;  %v223_v12 = vld [vmem:[%s1356_s14 + $0xd0] sm:$0xff] }
  0x57   : > { %v396_v26 = vadd.f32 %v1373_v10, %v298_v13  ;;  %v397_v27 = vadd.f32 %v1373_v10, %v299_v14  ;;  %v398_v28 = vadd.f32 %v1373_v10, %v300_v15  ;;  %v303_v29 = vmul.f32 %v1369_v7, %v205_v17  ;;  %v224_v13 = vld [vmem:[%s1356_s14 + $0xd8] sm:$0xff] }
  0x58   : > { %869 = vtanh.f32 %v393_v19  ;;  %v304_v30 = vmul.f32 %v1369_v7, %v206_v18  ;;  %v305_v32 = vmul.f32 %v1369_v7, %v207_v23  ;;  %v306_v33 = vmul.f32 %v1369_v7, %v208_v24  ;;  %v225_v18 = vld [vmem:[%s1356_s14 + $0xe0] sm:$0xff]  ;;  %v226_v23 = vld [vmem:[%s1356_s14 + $0xe8] sm:$0xff]  ;;  %v227_v24 = vld [vmem:[%s1356_s14 + $0xf0] sm:$0xff] }
  0x59   : > { %871 = vtanh.f32 %v394_v20  ;;  %v307_v34 = vmul.f32 %v1369_v7, %v209_v25  ;;  %v399_v37 = vadd.f32 %v1373_v10, %v301_v16  ;;  %v400_v38 = vadd.f32 %v1373_v10, %v302_v22  ;;  %v228_v25 = vld [vmem:[%s1356_s14 + $0xf8] sm:$0xff] }
  0x5a   : > { %873 = vtanh.f32 %v395_v21  ;;  %v401_v40 = vadd.f32 %v1373_v10, %v303_v29  ;;  %v402_v41 = vadd.f32 %v1373_v10, %v304_v30  ;;  %v308_v42 = vmul.f32 %v1369_v7, %v210_v31 }
  0x5b   : > { %875 = vtanh.f32 %v396_v26  ;;  %v403_v46 = vadd.f32 %v1373_v10, %v305_v32  ;;  %v309_v47 = vmul.f32 %v1369_v7, %v211_v35  ;;  %v310_v48 = vmul.f32 %v1369_v7, %v212_v36  ;;  %v230_v35 = vld [vmem:[%s1356_s14 + $0x108] sm:$0xff] }
  0x5c   : > { %877 = vtanh.f32 %v397_v27  ;;  %v404_v49 = vadd.f32 %v1373_v10, %v306_v33  ;;  %v405_v50 = vadd.f32 %v1373_v10, %v307_v34  ;;  %v311_v51 = vmul.f32 %v1369_v7, %v213_v39  ;;  %v229_v34 = vld [vmem:[%s1356_s14 + $0x100] sm:$0xff] }
  0x5d   : > { %879 = vtanh.f32 %v398_v28  ;;  %v312_v55 = vmul.f32 %v1369_v7, %v214_v43  ;;  %v313_v56 = vmul.f32 %v1369_v7, %v215_v44  ;;  %v314_v57 = vmul.f32 %v1369_v7, %v216_v45 }
  0x5e   : > { %v870_v54 = vpop.eup %869  ;;  %881 = vtanh.f32 %v399_v37  ;;  %v406_v62 = vadd.f32 %v1373_v10, %v308_v42  ;;  %v407_v63 = vadd.f32 %v1373_v10, %v309_v47  ;;  %v408_v0 = vadd.f32 %v1373_v10, %v310_v48  ;;  %v233_v42 = vld [vmem:[%s1356_s14 + $0x120] sm:$0xff] }
  0x5f   : > { %v872_v61 = vpop.eup %871  ;;  %587 = vst [vmem:[%s1426_s20] sm:$0xff] %v870_v54  ;;  %883 = vtanh.f32 %v400_v38  ;;  %v409_v2 = vadd.f32 %v1373_v10, %v311_v51  ;;  %v315_v3 = vmul.f32 %v1369_v7, %v217_v52  ;;  %v316_v4 = vmul.f32 %v1369_v7, %v218_v53  ;;  %v234_v51 = vld [vmem:[%s1356_s14 + $0x128] sm:$0xff] }
  0x60   : > { %v874_v1 = vpop.eup %873  ;;  %588 = vst [vmem:[%s1426_s20 + $0x8] sm:$0xff] %v872_v61  ;;  %885 = vtanh.f32 %v401_v40  ;;  %v317_v8 = vmul.f32 %v1369_v7, %v219_v58  ;;  %v318_v9 = vmul.f32 %v1369_v7, %v220_v59  ;;  %v319_v11 = vmul.f32 %v1369_v7, %v221_v60  ;;  %v231_v40 = vld [vmem:[%s1356_s14 + $0x110] sm:$0xff] }
  0x61   : > { %v876_v6 = vpop.eup %875  ;;  %589 = vst [vmem:[%s1426_s20 + $0x10] sm:$0xff] %v874_v1  ;;  %887 = vtanh.f32 %v402_v41  ;;  %v410_v15 = vadd.f32 %v1373_v10, %v312_v55  ;;  %v411_v16 = vadd.f32 %v1373_v10, %v313_v56  ;;  %v1447_v17 = vadd.f32 %v1373_v10, %v314_v57  ;;  %v232_v41 = vld [vmem:[%s1356_s14 + $0x118] sm:$0xff]  ;;  %v235_v56 = vld [vmem:[%s1356_s14 + $0x130] sm:$0xff] }
  0x62   : > { %v878_v14 = vpop.eup %877  ;;  %590 = vst [vmem:[%s1426_s20 + $0x18] sm:$0xff] %v876_v6  ;;  %889 = vtanh.f32 %v403_v46  ;;  %v1452_v20 = vadd.f32 %v1373_v10, %v315_v3  ;;  %v1455_v21 = vadd.f32 %v1373_v10, %v316_v4  ;;  %v320_v22 = vmul.f32 %v1369_v7, %v222_v5  ;;  %v236_v57 = vld [vmem:[%s1356_s14 + $0x138] sm:$0xff]  ;;  %v238_v3 = vld [vmem:[%s1356_s14 + $0x148] sm:$0xff]  ;;  %v239_v4 = vld [vmem:[%s1356_s14 + $0x150] sm:$0xff] }
  0x63   : > { %v880_v19 = vpop.eup %879  ;;  %591 = vst [vmem:[%s1426_s20 + $0x20] sm:$0xff] %v878_v14  ;;  %891 = vtanh.f32 %v404_v49  ;;  %v1463_v27 = vadd.f32 %v1373_v10, %v317_v8  ;;  %v321_v28 = vmul.f32 %v1369_v7, %v223_v12  ;;  %v322_v29 = vmul.f32 %v1369_v7, %v224_v13  ;;  %v240_v5 = vld [vmem:[%s1356_s14 + $0x158] sm:$0xff] }
  0x64   : > { %v882_v26 = vpop.eup %881  ;;  %592 = vst [vmem:[%s1426_s20 + $0x28] sm:$0xff] %v880_v19  ;;  %893 = vtanh.f32 %v405_v50  ;;  %v1469_v31 = vadd.f32 %v1373_v10, %v318_v9  ;;  %v1472_v32 = vadd.f32 %v1373_v10, %v319_v11  ;;  %v323_v33 = vmul.f32 %v1369_v7, %v225_v18 }
  0x65   : > { %v884_v30 = vpop.eup %883  ;;  %593 = vst [vmem:[%s1426_s20 + $0x30] sm:$0xff] %v882_v26  ;;  %895 = vtanh.f32 %v406_v62  ;;  %v324_v37 = vmul.f32 %v1369_v7, %v226_v23  ;;  %v325_v38 = vmul.f32 %v1369_v7, %v227_v24  ;;  %v326_v39 = vmul.f32 %v1369_v7, %v228_v25  ;;  %v237_v62 = vld [vmem:[%s1356_s14 + $0x140] sm:$0xff]  ;;  %v244_v23 = vld [vmem:[%s1356_s14 + $0x178] sm:$0xff] }
  0x66   : > { %v886_v36 = vpop.eup %885  ;;  %594 = vst [vmem:[%s1426_s20 + $0x38] sm:$0xff] %v884_v30  ;;  %897 = vtanh.f32 %v407_v63  ;;  %v1486_v44 = vadd.f32 %v1373_v10, %v320_v22  ;;  %v1489_v45 = vadd.f32 %v1373_v10, %v321_v28  ;;  %v1492_v46 = vadd.f32 %v1373_v10, %v322_v29  ;;  %v243_v22 = vld [vmem:[%s1356_s14 + $0x170] sm:$0xff]  ;;  %v245_v24 = vld [vmem:[%s1356_s14 + $0x180] sm:$0xff] }
  0x67   : > { %v888_v43 = vpop.eup %887  ;;  %595 = vst [vmem:[%s1426_s20 + $0x40] sm:$0xff] %v886_v36  ;;  %899 = vtanh.f32 %v408_v0  ;;  %v1496_v48 = vadd.f32 %v1373_v10, %v323_v33  ;;  %v327_v49 = vmul.f32 %v1369_v7, %v229_v34  ;;  %v328_v50 = vmul.f32 %v1369_v7, %v230_v35  ;;  %v246_v34 = vld [vmem:[%s1356_s14 + $0x188] sm:$0xff] }
  0x68   : > { %v890_v47 = vpop.eup %889  ;;  %596 = vst [vmem:[%s1426_s20 + $0x48] sm:$0xff] %v888_v43  ;;  %901 = vtanh.f32 %v409_v2  ;;  %v329_v53 = vmul.f32 %v1369_v7, %v231_v40  ;;  %v330_v54 = vmul.f32 %v1369_v7, %v232_v41  ;;  %v331_v55 = vmul.f32 %v1369_v7, %v233_v42 }
  0x69   : > { %v892_v52 = vpop.eup %891  ;;  %597 = vst [vmem:[%s1426_s20 + $0x50] sm:$0xff] %v890_v47  ;;  %903 = vtanh.f32 %v410_v15  ;;  %v1509_v59 = vadd.f32 %v1373_v10, %v324_v37  ;;  %v1512_v60 = vadd.f32 %v1373_v10, %v325_v38  ;;  %v1515_v61 = vadd.f32 %v1373_v10, %v326_v39  ;;  %v247_v38 = vld [vmem:[%s1356_s14 + $0x190] sm:$0xff]  ;;  %v248_v39 = vld [vmem:[%s1356_s14 + $0x198] sm:$0xff] }
  0x6a   : > { %v894_v58 = vpop.eup %893  ;;  %598 = vst [vmem:[%s1426_s20 + $0x58] sm:$0xff] %v892_v52  ;;  %905 = vtanh.f32 %v411_v16  ;;  %v1521_v0 = vadd.f32 %v1373_v10, %v327_v49  ;;  %v1524_v1 = vadd.f32 %v1373_v10, %v328_v50  ;;  %v332_v2 = vmul.f32 %v1369_v7, %v234_v51  ;;  %v241_v16 = vld [vmem:[%s1356_s14 + $0x160] sm:$0xff]  ;;  %v250_v51 = vld [vmem:[%s1356_s14 + $0x1a8] sm:$0xff]  ;;  %v251_v52 = vld [vmem:[%s1356_s14 + $0x1b0] sm:$0xff] }
  0x6b   : > { %v896_v63 = vpop.eup %895  ;;  %599 = vst [vmem:[%s1426_s20 + $0x60] sm:$0xff] %v894_v58  ;;  %907 = vtanh.f32 %v1447_v17  ;;  %v1533_v8 = vadd.f32 %v1373_v10, %v329_v53  ;;  %v333_v9 = vmul.f32 %v1369_v7, %v235_v56  ;;  %v334_v11 = vmul.f32 %v1369_v7, %v236_v57  ;;  %v242_v17 = vld [vmem:[%s1356_s14 + $0x168] sm:$0xff]  ;;  %v252_v53 = vld [vmem:[%s1356_s14 + $0x1b8] sm:$0xff] }
  0x6c   : > { %v898_v6 = vpop.eup %897  ;;  %600 = vst [vmem:[%s1426_s20 + $0x68] sm:$0xff] %v896_v63  ;;  %909 = vtanh.f32 %v1452_v20  ;;  %v1540_v13 = vadd.f32 %v1373_v10, %v330_v54  ;;  %v1543_v14 = vadd.f32 %v1373_v10, %v331_v55  ;;  %v335_v15 = vmul.f32 %v1369_v7, %v237_v62  ;;  %v253_v63 = vld [vmem:[%s1356_s14 + $0x1c0] sm:$0xff] }
  0x6d   : > { %v900_v12 = vpop.eup %899  ;;  %601 = vst [vmem:[%s1426_s20 + $0x70] sm:$0xff] %v898_v6  ;;  %911 = vtanh.f32 %v1455_v21  ;;  %v336_v19 = vmul.f32 %v1369_v7, %v238_v3  ;;  %v337_v20 = vmul.f32 %v1369_v7, %v239_v4  ;;  %v338_v21 = vmul.f32 %v1369_v7, %v240_v5  ;;  %v255_v6 = vld [vmem:[%s1356_s14 + $0x1d0] sm:$0xff] }
  0x6e   : > { %v902_v18 = vpop.eup %901  ;;  %602 = vst [vmem:[%s1426_s20 + $0x78] sm:$0xff] %v900_v12  ;;  %913 = vtanh.f32 %v1463_v27  ;;  %v1559_v26 = vadd.f32 %v1373_v10, %v332_v2  ;;  %v1562_v27 = vadd.f32 %v1373_v10, %v333_v9  ;;  %v1565_v28 = vadd.f32 %v1373_v10, %v334_v11  ;;  %v254_v2 = vld [vmem:[%s1356_s14 + $0x1c8] sm:$0xff]  ;;  %v256_v9 = vld [vmem:[%s1356_s14 + $0x1d8] sm:$0xff]  ;;  %v257_v11 = vld [vmem:[%s1356_s14 + $0x1e0] sm:$0xff] }
  0x6f   : > { %v904_v25 = vpop.eup %903  ;;  %603 = vst [vmem:[%s1426_s20 + $0x80] sm:$0xff] %v902_v18  ;;  %915 = vtanh.f32 %v1469_v31  ;;  %v1570_v30 = vadd.f32 %v1373_v10, %v335_v15  ;;  %v339_v31 = vmul.f32 %v1369_v7, %v241_v16  ;;  %v340_v33 = vmul.f32 %v1369_v7, %v242_v17 }
  0x70   : > { %v906_v29 = vpop.eup %905  ;;  %604 = vst [vmem:[%s1426_s20 + $0x88] sm:$0xff] %v904_v25  ;;  %917 = vtanh.f32 %v1472_v32  ;;  %v341_v36 = vmul.f32 %v1369_v7, %v243_v22  ;;  %v342_v37 = vmul.f32 %v1369_v7, %v244_v23  ;;  %v343_v32 = vmul.f32 %v1369_v7, %v245_v24 }
  0x71   : > { %v908_v35 = vpop.eup %907  ;;  %605 = vst [vmem:[%s1426_s20 + $0x90] sm:$0xff] %v906_v29  ;;  %919 = vtanh.f32 %v1486_v44  ;;  %v1585_v41 = vadd.f32 %v1373_v10, %v336_v19  ;;  %v1588_v42 = vadd.f32 %v1373_v10, %v337_v20  ;;  %v1591_v43 = vadd.f32 %v1373_v10, %v338_v21  ;;  %v249_v44 = vld [vmem:[%s1356_s14 + $0x1a0] sm:$0xff]  ;;  %v258_v20 = vld [vmem:[%s1356_s14 + $0x1e8] sm:$0xff] }
  0x72   : > { %v910_v40 = vpop.eup %909  ;;  %606 = vst [vmem:[%s1426_s20 + $0x98] sm:$0xff] %v908_v35  ;;  %921 = vtanh.f32 %v1489_v45  ;;  %v1597_v49 = vadd.f32 %v1373_v10, %v339_v31  ;;  %v1600_v45 = vadd.f32 %v1373_v10, %v340_v33  ;;  %v344_v50 = vmul.f32 %v1369_v7, %v246_v34  ;;  %v261_v31 = vld [vmem:[%s1356_s14 + $0x200] sm:$0xff]  ;;  %v262_v33 = vld [vmem:[%s1356_s14 + $0x208] sm:$0xff]  ;;  %v263_v34 = vld [vmem:[%s1356_s14 + $0x210] sm:$0xff] }
  0x73   : > { %v912_v47 = vpop.eup %911  ;;  %607 = vst [vmem:[%s1426_s20 + $0xa0] sm:$0xff] %v910_v40  ;;  %923 = vtanh.f32 %v1492_v46  ;;  %v1609_v46 = vadd.f32 %v1373_v10, %v341_v36  ;;  %v345_v55 = vmul.f32 %v1369_v7, %v247_v38  ;;  %v346_v56 = vmul.f32 %v1369_v7, %v248_v39  ;;  %v260_v38 = vld [vmem:[%s1356_s14 + $0x1f8] sm:$0xff] }
  0x74   : > { %v914_v54 = vpop.eup %913  ;;  %608 = vst [vmem:[%s1426_s20 + $0xa8] sm:$0xff] %v912_v47  ;;  %925 = vtanh.f32 %v1496_v48  ;;  %v1616_v58 = vadd.f32 %v1373_v10, %v342_v37  ;;  %v1619_v48 = vadd.f32 %v1373_v10, %v343_v32  ;;  %v347_v62 = vmul.f32 %v1369_v7, %v249_v44  ;;  %v259_v32 = vld [vmem:[%s1356_s14 + $0x1f0] sm:$0xff]  ;;  %v264_v39 = vld [vmem:[%s1356_s14 + $0x218] sm:$0xff] }
  0x75   : > { %v916_v57 = vpop.eup %915  ;;  %609 = vst [vmem:[%s1426_s20 + $0xb0] sm:$0xff] %v914_v54  ;;  %927 = vtanh.f32 %v1509_v59  ;;  %v348_v4 = vmul.f32 %v1369_v7, %v250_v51  ;;  %v349_v59 = vmul.f32 %v1369_v7, %v251_v52  ;;  %v350_v5 = vmul.f32 %v1369_v7, %v252_v53  ;;  %v265_v53 = vld [vmem:[%s1356_s14 + $0x220] sm:$0xff]  ;;  %v266_v54 = vld [vmem:[%s1356_s14 + $0x228] sm:$0xff] }
  0x76   : > { %v918_v3 = vpop.eup %917  ;;  %610 = vst [vmem:[%s1426_s20 + $0xb8] sm:$0xff] %v916_v57  ;;  %929 = vtanh.f32 %v1512_v60  ;;  %v1635_v15 = vadd.f32 %v1373_v10, %v344_v50  ;;  %v1638_v60 = vadd.f32 %v1373_v10, %v345_v55  ;;  %v1641_v16 = vadd.f32 %v1373_v10, %v346_v56 }
  0x77   : > { %v920_v12 = vpop.eup %919  ;;  %611 = vst [vmem:[%s1426_s20 + $0xc0] sm:$0xff] %v918_v3  ;;  %931 = vtanh.f32 %v1515_v61  ;;  %v1646_v18 = vadd.f32 %v1373_v10, %v347_v62  ;;  %v351_v61 = vmul.f32 %v1369_v7, %v253_v63  ;;  %v352_v19 = vmul.f32 %v1369_v7, %v254_v2  ;;  %v267_v62 = vld [vmem:[%s1356_s14 + $0x230] sm:$0xff]  ;;  %v268_v63 = vld [vmem:[%s1356_s14 + $0x238] sm:$0xff]  ;;  %v269_v2 = vld [vmem:[%s1356_s14 + $0x240] sm:$0xff] }
  0x78   : > { %v922_v17 = vpop.eup %921  ;;  %612 = vst [vmem:[%s1426_s20 + $0xc8] sm:$0xff] %v920_v12  ;;  %933 = vtanh.f32 %v1521_v0  ;;  %v353_v22 = vmul.f32 %v1369_v7, %v255_v6  ;;  %v354_v0 = vmul.f32 %v1369_v7, %v256_v9  ;;  %v355_v23 = vmul.f32 %v1369_v7, %v257_v11 }
  0x79   : > { %v924_v21 = vpop.eup %923  ;;  %613 = vst [vmem:[%s1426_s20 + $0xd0] sm:$0xff] %v922_v17  ;;  %935 = vtanh.f32 %v1524_v1  ;;  %v1659_v25 = vadd.f32 %v1373_v10, %v348_v4  ;;  %v1662_v29 = vadd.f32 %v1373_v10, %v349_v59  ;;  %v1665_v1 = vadd.f32 %v1373_v10, %v350_v5  ;;  %v270_v5 = vld [vmem:[%s1356_s14 + $0x248] sm:$0xff] }
  0x7a   : > { %v926_v24 = vpop.eup %925  ;;  %614 = vst [vmem:[%s1426_s20 + $0xd8] sm:$0xff] %v924_v21  ;;  %937 = vtanh.f32 %v1533_v8  ;;  %v1673_v8 = vadd.f32 %v1373_v10, %v351_v61  ;;  %v1676_v36 = vadd.f32 %v1373_v10, %v352_v19  ;;  %v1679_v37 = vmul.f32 %v1369_v7, %v258_v20  ;;  %v271_v19 = vld [vmem:[%s1356_s14 + $0x250] sm:$0xff]  ;;  %v272_v20 = vld [vmem:[%s1356_s14 + $0x258] sm:$0xff] }
  0x7b   : > { %v928_v35 = vpop.eup %927  ;;  %615 = vst [vmem:[%s1426_s20 + $0xe0] sm:$0xff] %v926_v24  ;;  %939 = vtanh.f32 %v1540_v13  ;;  %v1687_v13 = vadd.f32 %v1373_v10, %v353_v22  ;;  %v1690_v44 = vadd.f32 %v1373_v10, %v354_v0  ;;  %v1693_v47 = vadd.f32 %v1373_v10, %v355_v23  ;;  %v273_v23 = vld [vmem:[%s1356_s14 + $0x260] sm:$0xff]  ;;  %v274_v24 = vld [vmem:[%s1356_s14 + $0x268] sm:$0xff] }
  0x7c   : > { %v930_v40 = vpop.eup %929  ;;  %616 = vst [vmem:[%s1426_s20 + $0xe8] sm:$0xff] %v928_v35  ;;  %941 = vtanh.f32 %v1543_v14  ;;  %v359_v51 = vmul.f32 %v1369_v7, %v261_v31  ;;  %v360_v14 = vmul.f32 %v1369_v7, %v262_v33  ;;  %v361_v52 = vmul.f32 %v1369_v7, %v263_v34  ;;  %v275_v31 = vld [vmem:[%s1356_s14 + $0x270] sm:$0xff] }
  0x7d   : > { %v932_v50 = vpop.eup %931  ;;  %617 = vst [vmem:[%s1426_s20 + $0xf0] sm:$0xff] %v930_v40  ;;  %943 = vtanh.f32 %v1559_v26  ;;  %v1705_v56 = vmul.f32 %v1369_v7, %v259_v32  ;;  %v1708_v26 = vmul.f32 %v1369_v7, %v260_v38  ;;  %v362_v57 = vmul.f32 %v1369_v7, %v264_v39  ;;  %v276_v32 = vld [vmem:[%s1356_s14 + $0x278] sm:$0xff] }
  0x7e   : > { %v934_v55 = vpop.eup %933  ;;  %618 = vst [vmem:[%s1426_s20 + $0xf8] sm:$0xff] %v932_v50  ;;  %945 = vtanh.f32 %v1562_v27  ;;  %v1717_v4 = vadd.f32 %v1373_v10, %v359_v51  ;;  %v1720_v27 = vadd.f32 %v1373_v10, %v360_v14  ;;  %v1723_v59 = vadd.f32 %v1373_v10, %v361_v52  ;;  %v277_v52 = vld [vmem:[%s1356_s14 + $0x280] sm:$0xff] }
  0x7f   : > { %v936_v3 = vpop.eup %935  ;;  %619 = vst [vmem:[%s1426_s20 + $0x100] sm:$0xff] %v934_v55  ;;  %947 = vtanh.f32 %v1565_v28  ;;  %v1729_v9 = vadd.f32 %v1373_v10, %v362_v57  ;;  %v363_v28 = vmul.f32 %v1369_v7, %v265_v53  ;;  %v364_v11 = vmul.f32 %v1369_v7, %v266_v54  ;;  %v278_v53 = vld [vmem:[%s1356_s14 + $0x288] sm:$0xff] }
  0x80   : > { %v938_v6 = vpop.eup %937  ;;  %620 = vst [vmem:[%s1426_s20 + $0x108] sm:$0xff] %v936_v3  ;;  %949 = vtanh.f32 %v1570_v30  ;;  %v365_v17 = vmul.f32 %v1369_v7, %v267_v62  ;;  %v366_v61 = vmul.f32 %v1369_v7, %v268_v63  ;;  %v367_v30 = vmul.f32 %v1369_v7, %v269_v2  ;;  %v279_v62 = vld [vmem:[%s1356_s14 + $0x290] sm:$0xff]  ;;  %v280_v63 = vld [vmem:[%s1356_s14 + $0x298] sm:$0xff]  ;;  %v281_v2 = vld [vmem:[%s1356_s14 + $0x2a0] sm:$0xff] }
  0x81   : > { %v940_v12 = vpop.eup %939  ;;  %621 = vst [vmem:[%s1426_s20 + $0x110] sm:$0xff] %v938_v6  ;;  %951 = vtanh.f32 %v1585_v41  ;;  %v1743_v22 = vadd.f32 %v1373_v10, %v363_v28  ;;  %v1746_v41 = vadd.f32 %v1373_v10, %v364_v11  ;;  %v368_v0 = vmul.f32 %v1369_v7, %v270_v5  ;;  %v282_v28 = vld [vmem:[%s1356_s14 + $0x2a8] sm:$0xff] }
  0x82   : > { %v942_v21 = vpop.eup %941  ;;  %622 = vst [vmem:[%s1426_s20 + $0x118] sm:$0xff] %v940_v12  ;;  %953 = vtanh.f32 %v1588_v42  ;;  %v1755_v34 = vadd.f32 %v1373_v10, %v365_v17  ;;  %v1758_v42 = vadd.f32 %v1373_v10, %v366_v61  ;;  %v1761_v35 = vadd.f32 %v1373_v10, %v367_v30 }
  0x83   : > { %v944_v33 = vpop.eup %943  ;;  %623 = vst [vmem:[%s1426_s20 + $0x120] sm:$0xff] %v942_v21  ;;  %955 = vtanh.f32 %v1591_v43  ;;  %v1767_v39 = vadd.f32 %v1373_v10, %v368_v0  ;;  %v369_v43 = vmul.f32 %v1369_v7, %v271_v19  ;;  %v370_v40 = vmul.f32 %v1369_v7, %v272_v20  ;;  %v284_v21 = vld [vmem:[%s1356_s14 + $0x2b8] sm:$0xff] }
  0x84   : > { %v946_v38 = vpop.eup %945  ;;  %624 = vst [vmem:[%s1426_s20 + $0x128] sm:$0xff] %v944_v33  ;;  %957 = vtanh.f32 %v1597_v49  ;;  %v371_v51 = vmul.f32 %v1369_v7, %v273_v23  ;;  %v372_v14 = vmul.f32 %v1369_v7, %v274_v24  ;;  %v373_v49 = vmul.f32 %v1369_v7, %v275_v31  ;;  %v285_v31 = vld [vmem:[%s1356_s14 + $0x2c0] sm:$0xff] }
  0x85   : > { %v948_v50 = vpop.eup %947  ;;  %625 = vst [vmem:[%s1426_s20 + $0x130] sm:$0xff] %v946_v38  ;;  %959 = vtanh.f32 %v1600_v45  ;;  %v1781_v55 = vadd.f32 %v1373_v10, %v369_v43  ;;  %v1784_v45 = vadd.f32 %v1373_v10, %v370_v40  ;;  %v374_v57 = vmul.f32 %v1369_v7, %v276_v32  ;;  %v286_v43 = vld [vmem:[%s1356_s14 + $0x2c8] sm:$0xff] }
  0x86   : > { %v950_v54 = vpop.eup %949  ;;  %626 = vst [vmem:[%s1426_s20 + $0x138] sm:$0xff] %v948_v50  ;;  %961 = vtanh.f32 %v1609_v46  ;;  %v1793_v5 = vadd.f32 %v1373_v10, %v371_v51  ;;  %v1796_v46 = vadd.f32 %v1373_v10, %v372_v14  ;;  %v1799_v6 = vadd.f32 %v1373_v10, %v373_v49  ;;  %v287_v14 = vld [vmem:[%s1356_s14 + $0x2d0] sm:$0xff] }
  0x87   : > { %v952_v3 = vpop.eup %951  ;;  %627 = vst [vmem:[%s1426_s20 + $0x140] sm:$0xff] %v950_v54  ;;  %963 = vtanh.f32 %v1616_v58  ;;  %v1805_v12 = vadd.f32 %v1373_v10, %v374_v57  ;;  %v375_v58 = vmul.f32 %v1369_v7, %v277_v52  ;;  %v376_v17 = vmul.f32 %v1369_v7, %v278_v53  ;;  %v288_v54 = vld [vmem:[%s1356_s14 + $0x2d8] sm:$0xff] }
  0x88   : > { %v954_v11 = vpop.eup %953  ;;  %628 = vst [vmem:[%s1426_s20 + $0x148] sm:$0xff] %v952_v3  ;;  %965 = vtanh.f32 %v1619_v48  ;;  %v377_v30 = vmul.f32 %v1369_v7, %v279_v62  ;;  %v378_v19 = vmul.f32 %v1369_v7, %v280_v63  ;;  %v379_v20 = vmul.f32 %v1369_v7, %v281_v2  ;;  %v283_v48 = vld [vmem:[%s1356_s14 + $0x2b0] sm:$0xff]  ;;  %v289_v2 = vld [vmem:[%s1356_s14 + $0x2e0] sm:$0xff] }
  0x89   : > { %v956_v61 = vpop.eup %955  ;;  %629 = vst [vmem:[%s1426_s20 + $0x150] sm:$0xff] %v954_v11  ;;  %967 = vtanh.f32 %v1635_v15  ;;  %v1819_v23 = vadd.f32 %v1373_v10, %v375_v58  ;;  %v1822_v24 = vadd.f32 %v1373_v10, %v376_v17  ;;  %v380_v15 = vmul.f32 %v1369_v7, %v282_v28  ;;  %v290_v58 = vld [vmem:[%s1356_s14 + $0x2e8] sm:$0xff] }
  0x8a   : > { %v958_v0 = vpop.eup %957  ;;  %630 = vst [vmem:[%s1426_s20 + $0x158] sm:$0xff] %v956_v61  ;;  %969 = vtanh.f32 %v1638_v60  ;;  %v1829_v32 = vadd.f32 %v1373_v10, %v377_v30  ;;  %v1832_v60 = vadd.f32 %v1373_v10, %v378_v19  ;;  %v1835_v38 = vadd.f32 %v1373_v10, %v379_v20  ;;  %v291_v19 = vld [vmem:[%s1356_s14 + $0x2f0] sm:$0xff] }
  0x8b   : > { %v960_v33 = vpop.eup %959  ;;  %631 = vst [vmem:[%s1426_s20 + $0x160] sm:$0xff] %v958_v0  ;;  %971 = vtanh.f32 %v1641_v16  ;;  %v1841_v50 = vadd.f32 %v1373_v10, %v380_v15  ;;  %v381_v16 = vmul.f32 %v1369_v7, %v283_v48  ;;  %v382_v51 = vmul.f32 %v1369_v7, %v284_v21  ;;  %v292_v0 = vld [vmem:[%s1356_s14 + $0x2f8] sm:$0xff] }
  0x8c   : > { %v962_v40 = vpop.eup %961  ;;  %632 = vst [vmem:[%s1426_s20 + $0x168] sm:$0xff] %v960_v33  ;;  %973 = vtanh.f32 %v1646_v18  ;;  %v383_v52 = vmul.f32 %v1369_v7, %v285_v31  ;;  %v384_v53 = vmul.f32 %v1369_v7, %v286_v43  ;;  %v385_v18 = vmul.f32 %v1369_v7, %v287_v14  ;;  %v293_v33 = vld [vmem:[%s1356_s14 + $0x300] sm:$0xff] }
  0x8d   : > { %v964_v49 = vpop.eup %963  ;;  %633 = vst [vmem:[%s1426_s20 + $0x170] sm:$0xff] %v962_v40  ;;  %975 = vtanh.f32 %v1659_v25  ;;  %v1855_v62 = vadd.f32 %v1373_v10, %v381_v16  ;;  %v1858_v63 = vadd.f32 %v1373_v10, %v382_v51  ;;  %v386_v25 = vmul.f32 %v1369_v7, %v288_v54 }
  0x8e   : > { %v966_v57 = vpop.eup %965  ;;  %634 = vst [vmem:[%s1426_s20 + $0x178] sm:$0xff] %v964_v49  ;;  %977 = vtanh.f32 %v1662_v29  ;;  %v1865_v28 = vadd.f32 %v1373_v10, %v383_v52  ;;  %v1868_v29 = vadd.f32 %v1373_v10, %v384_v53  ;;  %v1871_v11 = vadd.f32 %v1373_v10, %v385_v18 }
  0x8f   : > { %v968_v3 = vpop.eup %967  ;;  %635 = vst [vmem:[%s1426_s20 + $0x180] sm:$0xff] %v966_v57  ;;  %979 = vtanh.f32 %v1665_v1  ;;  %v1877_v61 = vadd.f32 %v1373_v10, %v386_v25  ;;  %v387_v1 = vmul.f32 %v1369_v7, %v289_v2  ;;  %v388_v30 = vmul.f32 %v1369_v7, %v290_v58 }
  0x90   : > { %v970_v17 = vpop.eup %969  ;;  %636 = vst [vmem:[%s1426_s20 + $0x188] sm:$0xff] %v968_v3  ;;  %981 = vtanh.f32 %v1673_v8  ;;  %v454_v48 = vadd.f32 %v1373_v10, %v1679_v37  ;;  %v455_v8 = vadd.f32 %v1373_v10, %v1705_v56  ;;  %v389_v21 = vmul.f32 %v1369_v7, %v291_v19 }
  0x91   : > { %v972_v20 = vpop.eup %971  ;;  %637 = vst [vmem:[%s1426_s20 + $0x190] sm:$0xff] %v970_v17  ;;  %983 = vtanh.f32 %v1676_v36  ;;  %v1893_v31 = vadd.f32 %v1373_v10, %v387_v1  ;;  %v1896_v36 = vadd.f32 %v1373_v10, %v388_v30  ;;  %v390_v37 = vmul.f32 %v1369_v7, %v292_v0 }
  0x92   : > { %v974_v15 = vpop.eup %973  ;;  %638 = vst [vmem:[%s1426_s20 + $0x198] sm:$0xff] %v972_v20  ;;  %985 = vtanh.f32 %v1687_v13  ;;  %v456_v43 = vadd.f32 %v1373_v10, %v1708_v26  ;;  %v1905_v13 = vadd.f32 %v1373_v10, %v389_v21  ;;  %v391_v40 = vmul.f32 %v1369_v7, %v293_v33 }
  0x93   : > { %v976_v56 = vpop.eup %975  ;;  %639 = vst [vmem:[%s1426_s20 + $0x1a0] sm:$0xff] %v974_v15  ;;  %987 = vtanh.f32 %v1690_v44  ;;  %v1911_v51 = vadd.f32 %v1373_v10, %v390_v37 }
  0x94   : > { %v978_v16 = vpop.eup %977  ;;  %640 = vst [vmem:[%s1426_s20 + $0x1a8] sm:$0xff] %v976_v56  ;;  %989 = vtanh.f32 %v1693_v47  ;;  %v1915_v44 = vadd.f32 %v1373_v10, %v391_v40 }
  0x95   : > { %v980_v14 = vpop.eup %979  ;;  %641 = vst [vmem:[%s1426_s20 + $0x1b0] sm:$0xff] %v978_v16  ;;  %991 = vtanh.f32 %v454_v48 }
  0x96   : > { %v982_v26 = vpop.eup %981  ;;  %642 = vst [vmem:[%s1426_s20 + $0x1b8] sm:$0xff] %v980_v14  ;;  %993 = vtanh.f32 %v455_v8 }
  0x97   : > { %v984_v7 = vpop.eup %983  ;;  %643 = vst [vmem:[%s1426_s20 + $0x1c0] sm:$0xff] %v982_v26  ;;  %995 = vtanh.f32 %v456_v43 }
  0x98   : > { %v986_v47 = vpop.eup %985  ;;  %644 = vst [vmem:[%s1426_s20 + $0x1c8] sm:$0xff] %v984_v7  ;;  %997 = vtanh.f32 %v1717_v4 }
  0x99   : > { %v988_v49 = vpop.eup %987  ;;  %645 = vst [vmem:[%s1426_s20 + $0x1d0] sm:$0xff] %v986_v47  ;;  %999 = vtanh.f32 %v1720_v27 }
  0x9a   : > { %v990_v10 = vpop.eup %989  ;;  %646 = vst [vmem:[%s1426_s20 + $0x1d8] sm:$0xff] %v988_v49  ;;  %1001 = vtanh.f32 %v1723_v59 }
  0x9b   : > { %v992_v52 = vpop.eup %991  ;;  %647 = vst [vmem:[%s1426_s20 + $0x1e0] sm:$0xff] %v990_v10  ;;  %1003 = vtanh.f32 %v1729_v9 }
  0x9c   : > { %v994_v53 = vpop.eup %993  ;;  %648 = vst [vmem:[%s1426_s20 + $0x1e8] sm:$0xff] %v992_v52  ;;  %1005 = vtanh.f32 %v1743_v22 }
  0x9d   : > { %v996_v4 = vpop.eup %995  ;;  %649 = vst [vmem:[%s1426_s20 + $0x1f0] sm:$0xff] %v994_v53  ;;  %1007 = vtanh.f32 %v1746_v41 }
  0x9e   : > { %v998_v27 = vpop.eup %997  ;;  %650 = vst [vmem:[%s1426_s20 + $0x1f8] sm:$0xff] %v996_v4  ;;  %1009 = vtanh.f32 %v1755_v34 }
  0x9f   : > { %v1000_v59 = vpop.eup %999  ;;  %651 = vst [vmem:[%s1426_s20 + $0x200] sm:$0xff] %v998_v27  ;;  %1011 = vtanh.f32 %v1758_v42 }
  0xa0   : > { %v1002_v9 = vpop.eup %1001  ;;  %652 = vst [vmem:[%s1426_s20 + $0x208] sm:$0xff] %v1000_v59  ;;  %1013 = vtanh.f32 %v1761_v35 }
  0xa1   : > { %v1004_v22 = vpop.eup %1003  ;;  %653 = vst [vmem:[%s1426_s20 + $0x210] sm:$0xff] %v1002_v9  ;;  %1015 = vtanh.f32 %v1767_v39 }
  0xa2   : > { %v1006_v41 = vpop.eup %1005  ;;  %654 = vst [vmem:[%s1426_s20 + $0x218] sm:$0xff] %v1004_v22  ;;  %1017 = vtanh.f32 %v1781_v55 }
  0xa3   : > { %v1008_v34 = vpop.eup %1007  ;;  %655 = vst [vmem:[%s1426_s20 + $0x220] sm:$0xff] %v1006_v41  ;;  %1019 = vtanh.f32 %v1784_v45 }
  0xa4   : > { %v1010_v42 = vpop.eup %1009  ;;  %656 = vst [vmem:[%s1426_s20 + $0x228] sm:$0xff] %v1008_v34  ;;  %1021 = vtanh.f32 %v1793_v5 }
  0xa5   : > { %v1012_v35 = vpop.eup %1011  ;;  %657 = vst [vmem:[%s1426_s20 + $0x230] sm:$0xff] %v1010_v42  ;;  %1023 = vtanh.f32 %v1796_v46 }
  0xa6   : > { %v1014_v39 = vpop.eup %1013  ;;  %658 = vst [vmem:[%s1426_s20 + $0x238] sm:$0xff] %v1012_v35  ;;  %1025 = vtanh.f32 %v1799_v6 }
  0xa7   : > { %v1016_v55 = vpop.eup %1015  ;;  %659 = vst [vmem:[%s1426_s20 + $0x240] sm:$0xff] %v1014_v39  ;;  %1027 = vtanh.f32 %v1805_v12 }
  0xa8   : > { %v1018_v45 = vpop.eup %1017  ;;  %660 = vst [vmem:[%s1426_s20 + $0x248] sm:$0xff] %v1016_v55  ;;  %1029 = vtanh.f32 %v1819_v23 }
  0xa9   : > { %v1020_v5 = vpop.eup %1019  ;;  %661 = vst [vmem:[%s1426_s20 + $0x250] sm:$0xff] %v1018_v45  ;;  %1031 = vtanh.f32 %v1822_v24 }
  0xaa   : > { %v1022_v46 = vpop.eup %1021  ;;  %662 = vst [vmem:[%s1426_s20 + $0x258] sm:$0xff] %v1020_v5  ;;  %1033 = vtanh.f32 %v1829_v32 }
  0xab   : > { %v1024_v6 = vpop.eup %1023  ;;  %663 = vst [vmem:[%s1426_s20 + $0x260] sm:$0xff] %v1022_v46  ;;  %1035 = vtanh.f32 %v1832_v60 }
  0xac   : > { %v1026_v12 = vpop.eup %1025  ;;  %664 = vst [vmem:[%s1426_s20 + $0x268] sm:$0xff] %v1024_v6  ;;  %1037 = vtanh.f32 %v1835_v38 }
  0xad   : > { %v1028_v23 = vpop.eup %1027  ;;  %665 = vst [vmem:[%s1426_s20 + $0x270] sm:$0xff] %v1026_v12  ;;  %1039 = vtanh.f32 %v1841_v50 }
  0xae   : > { %v1030_v24 = vpop.eup %1029  ;;  %666 = vst [vmem:[%s1426_s20 + $0x278] sm:$0xff] %v1028_v23  ;;  %1041 = vtanh.f32 %v1855_v62 }
  0xaf   : > { %v1032_v32 = vpop.eup %1031  ;;  %667 = vst [vmem:[%s1426_s20 + $0x280] sm:$0xff] %v1030_v24  ;;  %1043 = vtanh.f32 %v1858_v63 }
  0xb0   : > { %v1034_v60 = vpop.eup %1033  ;;  %668 = vst [vmem:[%s1426_s20 + $0x288] sm:$0xff] %v1032_v32  ;;  %1045 = vtanh.f32 %v1865_v28 }
  0xb1   : > { %v1036_v38 = vpop.eup %1035  ;;  %669 = vst [vmem:[%s1426_s20 + $0x290] sm:$0xff] %v1034_v60  ;;  %1047 = vtanh.f32 %v1868_v29 }
  0xb2   : > { %v1038_v50 = vpop.eup %1037  ;;  %670 = vst [vmem:[%s1426_s20 + $0x298] sm:$0xff] %v1036_v38  ;;  %1049 = vtanh.f32 %v1871_v11 }
  0xb3   : > { %v1040_v18 = vpop.eup %1039  ;;  %671 = vst [vmem:[%s1426_s20 + $0x2a0] sm:$0xff] %v1038_v50  ;;  %1051 = vtanh.f32 %v1877_v61 }
  0xb4   : > { %v1042_v54 = vpop.eup %1041  ;;  %672 = vst [vmem:[%s1426_s20 + $0x2a8] sm:$0xff] %v1040_v18  ;;  %1053 = vtanh.f32 %v1893_v31 }
  0xb5   : > { %v1044_v57 = vpop.eup %1043  ;;  %673 = vst [vmem:[%s1426_s20 + $0x2b0] sm:$0xff] %v1042_v54  ;;  %1055 = vtanh.f32 %v1896_v36 }
  0xb6   : > { %v1046_v62 = vpop.eup %1045  ;;  %674 = vst [vmem:[%s1426_s20 + $0x2b8] sm:$0xff] %v1044_v57  ;;  %1057 = vtanh.f32 %v1905_v13 }
  0xb7   : > { %v1048_v63 = vpop.eup %1047  ;;  %675 = vst [vmem:[%s1426_s20 + $0x2c0] sm:$0xff] %v1046_v62  ;;  %1059 = vtanh.f32 %v1911_v51 }
  0xb8   : > { %v1050_v25 = vpop.eup %1049  ;;  %676 = vst [vmem:[%s1426_s20 + $0x2c8] sm:$0xff] %v1048_v63  ;;  %1061 = vtanh.f32 %v1915_v44 }
  0xb9   : > { %v1052_v2 = vpop.eup %1051  ;;  %677 = vst [vmem:[%s1426_s20 + $0x2d0] sm:$0xff] %v1050_v25 }
  0xba   : > { %v1054_v3 = vpop.eup %1053  ;;  %678 = vst [vmem:[%s1426_s20 + $0x2d8] sm:$0xff] %v1052_v2 }
  0xbb   : > { %v1056_v28 = vpop.eup %1055  ;;  %679 = vst [vmem:[%s1426_s20 + $0x2e0] sm:$0xff] %v1054_v3  ;;  %691 = sbr.rel (!%p1274_p11) target bundleno = 223 (0xdf), region = 40 }
  0xbc   : > { %v1058_v29 = vpop.eup %1057  ;;  %680 = vst [vmem:[%s1426_s20 + $0x2e8] sm:$0xff] %v1056_v28 }
  0xbd   : > { %v1060_v11 = vpop.eup %1059  ;;  %681 = vst [vmem:[%s1426_s20 + $0x2f0] sm:$0xff] %v1058_v29 }
  0xbe   : > { %v1062_v58 = vpop.eup %1061  ;;  %682 = vst [vmem:[%s1426_s20 + $0x2f8] sm:$0xff] %v1060_v11 }
  0xbf   : > { %683 = vst [vmem:[%s1426_s20 + $0x300] sm:$0xff] %v1062_v58 }
  0xc0   : > { %s2078_s5 = smov (!%p694_p6, %s693_s5), 97 }
  0xc1   : > { %s804_s6 = sshll.u32 %s2078_s5, 3 }
  0xc2   : > { %s697_s8 = ssub.s32 776, %s804_s6 }
  0xc3   : > { %s698_s16 = sshll.u32 %s697_s8, 4 }
  0xc4   : > { %699 = vsyncadd %s685_s19, %s698_s16  ;;  %p2001_p12 = scmp.ne.s32.totalorder %s804_s6, 0  ;;  %s812_s24 = smul.u32 776, %s1243_s13 }
  0xc5   : > { %s704_s25 = sshll.u32 %s1426_s20, 4  ;;  %s808_s26 = sshll.u32 %s2078_s5, 7  ;;  %s2011_s25 = int_to_ptr.vmem [resolvable:$true] %s704_s25 }
  0xc6   : > { %s702_s30 = scalar_lea.hbm %s2057_s2, %s812_s24  ;;  %s1117_s7 = sshra.s32 %s2011_s25, 4  ;;  %s1118_s7 = int_to_ptr.vmem [resolvable:$true] %s1117_s7 }
  0xc7   : > { %s706_s3 = sshll.u32 %s702_s30, 4  ;;  %s1119_s14 = sshrl.u32 %s808_s26, 4  ;;  %s2013_s3 = int_to_ptr.hbm [resolvable:$true] %s706_s3 }
  0xc8   : > { %s1124_s23 = scalar_lea.vmem %s1118_s7, %s1119_s14  ;;  %s1204_s13 = smov [#allocation7]  }
  0xc9   : > { %p1125_p11 = scmp.ne.s32.totalorder %s1118_s7, %s1124_s23  ;;  %s1128_s17 = scalar_lea.vmem %s1204_s13, 1552 }
  0xca   : > { %p1130_p5 = scmp.lt.s32.totalorder %s1128_s17, %s1124_s23 }
  0xcb   : > { %p1126_p13 = pnand %p1125_p11, %p2001_p12 }
  0xcd   : > { %p1127_p2 = pneg %p1126_p13 }
  0xcf   : > { %p1132_p10 = pnand %p1130_p5, %p1127_p2 }
  0xd1   : > { %1135 = shalt.err (!%p1132_p10)
}
  0xd2   : > { %s1136_s20 = sshra.s32 %s2013_s3, 4  ;;  %s1147_s16 = scalar_lea.hbm %s2057_s2, 784  ;;  %s1137_s20 = int_to_ptr.hbm [resolvable:$true] %s1136_s20 }
  0xd3   : > { %s1143_s27 = scalar_lea.hbm %s1137_s20, %s1119_s14  ;;  %p1148_p7 = scmp.lt.s32.totalorder %s1137_s20, %s2057_s2 }
  0xd4   : > { %p1144_p1 = scmp.ne.s32.totalorder %s1137_s20, %s1143_s27  ;;  %p1149_p8 = scmp.lt.s32.totalorder %s1147_s16, %s1143_s27 }
  0xd6   : > { %p1145_p0 = pnand %p1144_p1, %p2001_p12  ;;  %p1150_p9 = por %p1149_p8, %p1148_p7 }
  0xd8   : > { %p1146_p3 = pneg %p1145_p0 }
  0xda   : > { %p1151_p4 = pnand %p1150_p9, %p1146_p3 }
  0xdc   : > { %1154 = shalt.err (!%p1151_p4)
}
  0xdd   : > { %s1205_s28 = smov 128   ;;  %s1206_s30 = smov 8  }
  0xde   : > { %712 = dma.vmem_to_hbm [thread:$0]  (%p2001_p12), %s2011_s25, %s808_s26, %s2013_s3, %s685_s19, %s1205_s28, %s1205_s28, %s1206_s30  }
  0xdf PF: > { %s721_s7 = sand.u32 1, %s1186_s9   ;;  %p2069_p6 = scmp.ne.s32.totalorder %s2063_s22, 0 }
  0xe0   : > { %p2070_p11 = scmp.ge.s32.totalorder %s1198_s12, 2  ;;  %s722_s14 = scalar_lea.sflag [#allocation4], %s721_s7 }
  0xe2   : > { %p826_p13 = pnand %p2070_p11, %p2069_p6 }
  0xe4   : > { %p827_p2 = pneg %p826_p13 }
  0xe6   : > { %1181 = dma.done.wait (%p827_p2), %s722_s14, 12416  }
  0xe7   : > { %1183 = vsyncadd (%p827_p2), %s722_s14, 4294954880  ;;  %p16_p5 = scmp.ge.s32.totalorder %s1247_s15, 4   ;;  %s2071_s9 = smov %s1190_s10 }
  0xe8   : > { %s2072_s10 = smov %s1194_s11  ;;  %s2073_s11 = smov %s1259_s18 }
  0xe9   : > { %s2074_s12 = smov %s1247_s15  ;;  %18 = sbr.rel (!%p16_p5) target bundleno = 6 (0x6), region = 78 }
  0xee   :  { %728 = vsyncpa [#allocation3], 1 }
  0xef   :  { %730 = vsyncpa [#allocation3 + $0x1], 1 }
  0xf0   :  { %731 = vsyncpa [#allocation4], 1 }
  0xf1   :  { %733 = vsyncpa [#allocation4 + $0x1], 1 }
  0xf2   :  { %734 = vsyncpa [#allocation5], 1 }
  0xf3   :  { %736 = vsyncpa [#allocation5 + $0x1], 1 }

</bundles_post_ra>
